<compile_context>
chip_gen: v6e
topology: v6e:2x2x1
jax: 0.10.0
libtpu: 0.0.40
codegen_flags: <defaults>
</compile_context>

<pallas_src>
import functools
import math

import jax
import jax.numpy as jnp
from jax import lax
from jax.experimental import pallas as pl
from jax.experimental.pallas import tpu as pltpu

DIM = 32
NUM_HEADS = 4
SEQ_LEN = 8
EPS = 1e-5          # nn.LayerNorm default
NEG_INF = -1e30     # finite mask value (avoids inf-inf -> NaN hazards)


def _layernorm(x, w, b):
    mu = jnp.mean(x, axis=-1, keepdims=True)
    var = jnp.mean((x - mu) ** 2, axis=-1, keepdims=True)
    return (x - mu) * lax.rsqrt(var + EPS) * w + b


def _gelu_exact(x):
    # nn.GELU() default = exact erf-based gelu
    return 0.5 * x * (1.0 + lax.erf(x * (1.0 / math.sqrt(2.0))))


def adaln_kernel(x_ref, c_ref,
                 ln1w_ref, ln1b_ref, ln2w_ref, ln2b_ref,
                 condW_ref, condb_ref,
                 kqvW_ref, kqvb_ref,
                 ff1W_ref, ff1b_ref, ff2W_ref, ff2b_ref,
                 o_ref, *, seq_len, num_heads):
    x = x_ref[...]                       # (R, C) where R = seqs_per_step * seq_len
    c = c_ref[...]
    R, C = x.shape
    seqs = R // seq_len
    head_dim = C // num_heads
    scale = head_dim ** -0.5

    # cond_proj(c) -> (R, 4C), chunk into alpha1, beta1, alpha2, beta2
    cond = jnp.dot(c, condW_ref[...], preferred_element_type=jnp.float32) + condb_ref[...]
    alpha1 = cond[:, 0 * C:1 * C]
    beta1 = cond[:, 1 * C:2 * C]
    alpha2 = cond[:, 2 * C:3 * C]
    beta2 = cond[:, 3 * C:4 * C]

    # ---------------- attention branch ----------------
    h = _layernorm(x, ln1w_ref[...], ln1b_ref[...])
    h = h * (1.0 + beta1) + alpha1            # modulate(ln1(x), alpha1, beta1)

    kqv = jnp.dot(h, kqvW_ref[...], preferred_element_type=jnp.float32) + kqvb_ref[...]
    # torch chunk order: k, q, v
    k_all = kqv[:, 0 * C:1 * C]
    q_all = kqv[:, 1 * C:2 * C]
    v_all = kqv[:, 2 * C:3 * C]

    def to_heads(t):
        # (R, C) -> (num_heads * seqs, T, D), head-major batch order.
        return jnp.concatenate(
            [t[:, hh * head_dim:(hh + 1) * head_dim].reshape(seqs, seq_len, head_dim)
             for hh in range(num_heads)], axis=0)

    qb = to_heads(q_all)
    kb = to_heads(k_all)
    vb = to_heads(v_all)

    # causal mask hoisted once, broadcast over the (head, seq)-folded batch dim
    row = lax.broadcasted_iota(jnp.int32, (seq_len, seq_len), 0)
    col = lax.broadcasted_iota(jnp.int32, (seq_len, seq_len), 1)
    causal = (col <= row)[None, :, :]         # (1, T, T)

    # single head-batched score/softmax/value pass
    s = jnp.einsum('btd,bsd->bts', qb, kb,
                   preferred_element_type=jnp.float32) * scale
    s = jnp.where(causal, s, NEG_INF)
    s = s - jnp.max(s, axis=-1, keepdims=True)
    pexp = jnp.exp(s)
    denom = jnp.sum(pexp, axis=-1, keepdims=True)
    pexp = pexp * pl.reciprocal(denom, approx=False)
    ob = jnp.einsum('bts,bsd->btd', pexp, vb,
                    preferred_element_type=jnp.float32)     # (H*seqs, T, D)

    attn_out = jnp.concatenate(
        [ob[hh * seqs:(hh + 1) * seqs].reshape(R, head_dim)
         for hh in range(num_heads)], axis=-1)               # (R, C)

    x = x + attn_out

    # ---------------- feed-forward branch ----------------
    h2 = _layernorm(x, ln2w_ref[...], ln2b_ref[...])
    h2 = h2 * (1.0 + beta2) + alpha2          # modulate(ln2(x), alpha2, beta2)
    h2 = jnp.dot(h2, ff1W_ref[...], preferred_element_type=jnp.float32) + ff1b_ref[...]
    h2 = _gelu_exact(h2)
    h2 = jnp.dot(h2, ff2W_ref[...], preferred_element_type=jnp.float32) + ff2b_ref[...]
    h2 = _gelu_exact(h2)

    o_ref[...] = (x + h2).astype(o_ref.dtype)


def _round_up(a, m):
    return -(-a // m) * m


def _slab_config(num_seqs, seq_len):
    """Pick (seqs_per_step, grid_steps, vmem_limit_bytes), generation aware.

    v7x (2 TensorCores, 64 MiB VMEM): ~1024-row slabs and an even grid >= 2 so
    both cores are fed under dimension_semantics=("parallel",).
    Single-TC v5e/v6e (128 MiB VMEM): ~2048-row slabs, fewest possible steps
    (the grid is a serial loop there; every extra step is ~0.35us dead time).
    """
    try:
        kind = jax.devices()[0].device_kind.lower()
    except Exception:
        kind = ""
    dual_core = ("v7" in kind) or ("7x" in kind)
    try:
        phys_vmem = int(pltpu.get_tpu_info().vmem_capacity_bytes)
    except Exception:
        phys_vmem = (64 << 20) if (dual_core or not kind) else (128 << 20)

    if dual_core or phys_vmem <= (64 << 20):
        target_rows = 1024
        vmem_limit = min(phys_vmem * 3 // 4, 44 << 20)
    else:
        target_rows = 2048
        vmem_limit = min(phys_vmem * 3 // 4, 96 << 20)

    # keep the block's second-minor dim a multiple of 8 when the grid has >1 step
    sp_align = max(1, 8 // math.gcd(8, seq_len))
    target_sp = max(1, target_rows // seq_len)
    min_rows_per_core = 512

    if num_seqs <= target_sp:
        if dual_core and num_seqs * seq_len >= 2 * min_rows_per_core:
            sp = _round_up(-(-num_seqs // 2), sp_align)   # split across the 2 TCs
            steps = -(-num_seqs // sp)
        else:
            sp, steps = num_seqs, 1
    else:
        sp = _round_up(target_sp, sp_align)
        steps = -(-num_seqs // sp)
        if dual_core and steps % 2:
            steps += 1                                    # keep the grid even on v7x
    return sp, steps, int(vmem_limit)


def adaln_block(x, c, p):
    B, T, C = x.shape
    H = NUM_HEADS
    D = C // H

    sp, steps, vmem_limit = _slab_config(B, T)
    pad_seqs = steps * sp
    rows = sp * T                       # rows per grid step
    total_rows = pad_seqs * T

    # Fold batch+seq into rows so the matmul M-dim is the folded batch;
    # pad the sequence count up to steps*sp (padded rows are zero and dropped).
    x2 = x.reshape(B * T, C)
    c2 = c.reshape(B * T, C)
    if pad_seqs != B:
        pad = (pad_seqs - B) * T
        x2 = jnp.pad(x2, ((0, pad), (0, 0)))
        c2 = jnp.pad(c2, ((0, pad), (0, 0)))

    row_spec = pl.BlockSpec((rows, C), lambda i: (i, 0))

    def full_spec(arr):
        nd = arr.ndim
        return pl.BlockSpec(arr.shape, lambda i, _n=nd: (0,) * _n)

    weight_order = ['ln1_w', 'ln1_b', 'ln2_w', 'ln2_b',
                    'cond_W', 'cond_b', 'kqv_W', 'kqv_b',
                    'ff1_W', 'ff1_b', 'ff2_W', 'ff2_b']
    weights = [p[k] for k in weight_order]

    # Advisory cost estimate for XLA scheduling (weights counted once: their
    # constant index_map means they are DMA'd a single time).
    Rt = B * T
    flops = (2 * Rt * C * 4 * C            # cond_proj
             + 2 * Rt * C * 3 * C          # kqv
             + 2 * 2 * B * H * T * T * D   # attention scores + out
             + 2 * Rt * C * 4 * C          # ff1
             + 2 * Rt * 4 * C * C)         # ff2
    transcendentals = B * H * T * T + Rt * 4 * C + Rt * C + 2 * Rt
    param_bytes = sum(int(w.size) * w.dtype.itemsize for w in weights)
    bytes_accessed = int(3 * Rt * C * x.dtype.itemsize + param_bytes)

    kernel = functools.partial(adaln_kernel, seq_len=T, num_heads=H)

    out2 = pl.pallas_call(
        kernel,
        out_shape=jax.ShapeDtypeStruct((total_rows, C), x.dtype),
        grid_spec=pltpu.PrefetchScalarGridSpec(
            num_scalar_prefetch=0,
            grid=(steps,),
            in_specs=[row_spec, row_spec] + [full_spec(w) for w in weights],
            out_specs=pl.BlockSpec((rows, C), lambda i: (i, 0)),
        ),
        compiler_params=pltpu.CompilerParams(
            dimension_semantics=("parallel",),
            vmem_limit_bytes=vmem_limit),
        cost_estimate=pl.CostEstimate(flops=int(flops),
                                      transcendentals=int(transcendentals),
                                      bytes_accessed=bytes_accessed),
    )(x2, c2, *weights)

    out2 = out2[:B * T]
    return out2.reshape(B, T, C)


def reference(x, c, p):
    # pure-JAX reference mirroring the PyTorch forward
    def ln(t, w, b):
        mu = t.mean(-1, keepdims=True)
        var = ((t - mu) ** 2).mean(-1, keepdims=True)
        return (t - mu) / jnp.sqrt(var + EPS) * w + b

    def gelu(t):
        return 0.5 * t * (1.0 + jax.scipy.special.erf(t / jnp.sqrt(2.0)))

    B, T, C = x.shape
    cond = c @ p['cond_W'] + p['cond_b']
    a1, b1, a2, b2 = jnp.split(cond, 4, axis=-1)

    h = ln(x, p['ln1_w'], p['ln1_b']) * (1.0 + b1) + a1
    kqv = h @ p['kqv_W'] + p['kqv_b']
    k, q, v = jnp.split(kqv, 3, axis=-1)

    def split_heads(t):
        return t.reshape(B, T, NUM_HEADS, C // NUM_HEADS).transpose(0, 2, 1, 3)

    q, k, v = map(split_heads, (q, k, v))
    attn = jnp.einsum('bhtd,bhsd->bhts', q, k) * ((C // NUM_HEADS) ** -0.5)
    mask = jnp.tril(jnp.ones((T, T), bool))
    attn = jnp.where(mask, attn, -jnp.inf)
    attn = jax.nn.softmax(attn, axis=-1)
    out = jnp.einsum('bhts,bhsd->bhtd', attn, v).transpose(0, 2, 1, 3).reshape(B, T, C)
    x = x + out

    h2 = ln(x, p['ln2_w'], p['ln2_b']) * (1.0 + b2) + a2
    h2 = gelu(h2 @ p['ff1_W'] + p['ff1_b'])
    h2 = gelu(h2 @ p['ff2_W'] + p['ff2_b'])
    return x + h2


def init_params(key, dim):
    ks = jax.random.split(key, 8)
    s = 0.02
    return {
        'ln1_w': jnp.ones((1, dim), jnp.float32),
        'ln1_b': jnp.zeros((1, dim), jnp.float32),
        'ln2_w': jnp.ones((1, dim), jnp.float32),
        'ln2_b': jnp.zeros((1, dim), jnp.float32),
        'cond_W': s * jax.random.normal(ks[0], (dim, 4 * dim), jnp.float32),
        'cond_b': s * jax.random.normal(ks[1], (1, 4 * dim), jnp.float32),
        'kqv_W': s * jax.random.normal(ks[2], (dim, 3 * dim), jnp.float32),
        'kqv_b': s * jax.random.normal(ks[3], (1, 3 * dim), jnp.float32),
        'ff1_W': s * jax.random.normal(ks[4], (dim, 4 * dim), jnp.float32),
        'ff1_b': s * jax.random.normal(ks[5], (1, 4 * dim), jnp.float32),
        'ff2_W': s * jax.random.normal(ks[6], (4 * dim, dim), jnp.float32),
        'ff2_b': s * jax.random.normal(ks[7], (1, dim), jnp.float32),
    }


if __name__ == "__main__":
    B, T, C = 2, SEQ_LEN, DIM
    key = jax.random.PRNGKey(0)
    kx, kc, kp = jax.random.split(key, 3)
    x = jax.random.normal(kx, (B, T, C), jnp.float32)
    c = jax.random.normal(kc, (B, T, C), jnp.float32)
    params = init_params(kp, C)

    out = adaln_block(x, c, params)
    out = jax.block_until_ready(out)

    ref = reference(x, c, params)
    assert out.shape == (B, T, C)
    assert jnp.allclose(out, ref, atol=1e-4, rtol=1e-4), \
        f"max err {jnp.max(jnp.abs(out - ref))}"
    print("KERNEL_OK")
</pallas_src>

<mosaic_0001>
module attributes {stable_mosaic.version = 11 : i64} {
  func.func @adaln_kernel(%arg0: i32, %arg1: memref<16x32xf32, #tpu.memory_space<vmem>>, %arg2: memref<16x32xf32, #tpu.memory_space<vmem>>, %arg3: memref<1x32xf32, #tpu.memory_space<vmem>>, %arg4: memref<1x32xf32, #tpu.memory_space<vmem>>, %arg5: memref<1x32xf32, #tpu.memory_space<vmem>>, %arg6: memref<1x32xf32, #tpu.memory_space<vmem>>, %arg7: memref<32x128xf32, #tpu.memory_space<vmem>>, %arg8: memref<1x128xf32, #tpu.memory_space<vmem>>, %arg9: memref<32x96xf32, #tpu.memory_space<vmem>>, %arg10: memref<1x96xf32, #tpu.memory_space<vmem>>, %arg11: memref<32x128xf32, #tpu.memory_space<vmem>>, %arg12: memref<1x128xf32, #tpu.memory_space<vmem>>, %arg13: memref<128x32xf32, #tpu.memory_space<vmem>>, %arg14: memref<1x32xf32, #tpu.memory_space<vmem>>, %arg15: memref<16x32xf32, #tpu.memory_space<vmem>>) attributes {dimension_semantics = [#tpu.dimension_semantics<parallel>], iteration_bounds = array<i64: 1>, scalar_prefetch = 0 : i64, scratch_operands = 0 : i64, tpu.core_type = #tpu.core_type<tc>, window_params = [{transform_indices = @transform_0, window_bounds = array<i64: 16, 32>}, {transform_indices = @transform_1, window_bounds = array<i64: 16, 32>}, {pipeline_mode = #tpu.pipeline_mode<synchronous>, transform_indices = @transform_2, window_bounds = array<i64: 1, 32>}, {pipeline_mode = #tpu.pipeline_mode<synchronous>, transform_indices = @transform_3, window_bounds = array<i64: 1, 32>}, {pipeline_mode = #tpu.pipeline_mode<synchronous>, transform_indices = @transform_4, window_bounds = array<i64: 1, 32>}, {pipeline_mode = #tpu.pipeline_mode<synchronous>, transform_indices = @transform_5, window_bounds = array<i64: 1, 32>}, {pipeline_mode = #tpu.pipeline_mode<synchronous>, transform_indices = @transform_6, window_bounds = array<i64: 32, 128>}, {pipeline_mode = #tpu.pipeline_mode<synchronous>, transform_indices = @transform_7, window_bounds = array<i64: 1, 128>}, {pipeline_mode = #tpu.pipeline_mode<synchronous>, transform_indices = @transform_8, window_bounds = array<i64: 32, 96>}, {pipeline_mode = #tpu.pipeline_mode<synchronous>, transform_indices = @transform_9, window_bounds = array<i64: 1, 96>}, {pipeline_mode = #tpu.pipeline_mode<synchronous>, transform_indices = @transform_10, window_bounds = array<i64: 32, 128>}, {pipeline_mode = #tpu.pipeline_mode<synchronous>, transform_indices = @transform_11, window_bounds = array<i64: 1, 128>}, {pipeline_mode = #tpu.pipeline_mode<synchronous>, transform_indices = @transform_12, window_bounds = array<i64: 128, 32>}, {pipeline_mode = #tpu.pipeline_mode<synchronous>, transform_indices = @transform_13, window_bounds = array<i64: 1, 32>}, {transform_indices = @transform_14, window_bounds = array<i64: 16, 32>}]} {
    %c0 = arith.constant 0 : index
    %c0_0 = arith.constant 0 : index
    %0 = vector.load %arg1[%c0, %c0_0] : memref<16x32xf32, #tpu.memory_space<vmem>>, vector<16x32xf32>
    %c0_1 = arith.constant 0 : index
    %c0_2 = arith.constant 0 : index
    %1 = vector.load %arg2[%c0_1, %c0_2] : memref<16x32xf32, #tpu.memory_space<vmem>>, vector<16x32xf32>
    %c0_3 = arith.constant 0 : index
    %c0_4 = arith.constant 0 : index
    %2 = vector.load %arg7[%c0_3, %c0_4] : memref<32x128xf32, #tpu.memory_space<vmem>>, vector<32x128xf32>
    %cst = arith.constant dense<0.000000e+00> : vector<16x128xf32>
    %3 = tpu.matmul %1, %2, %cst {dimension_numbers = #tpu.dot_dimension_numbers<[1], [0], [0], [1], [0, 0, 1, 1], [], []>} : vector<16x32xf32>, vector<32x128xf32>, vector<16x128xf32> -> vector<16x128xf32>
    %c0_5 = arith.constant 0 : index
    %c0_6 = arith.constant 0 : index
    %4 = vector.load %arg8[%c0_5, %c0_6] : memref<1x128xf32, #tpu.memory_space<vmem>>, vector<1x128xf32>
    %5 = vector.broadcast %4 : vector<1x128xf32> to vector<16x128xf32>
    %6 = arith.addf %3, %5 : vector<16x128xf32>
    %7 = vector.extract_strided_slice %6 {offsets = [0, 0], sizes = [16, 32], strides = [1, 1]} : vector<16x128xf32> to vector<16x32xf32>
    %8 = vector.extract_strided_slice %6 {offsets = [0, 32], sizes = [16, 32], strides = [1, 1]} : vector<16x128xf32> to vector<16x32xf32>
    %9 = vector.extract_strided_slice %6 {offsets = [0, 64], sizes = [16, 32], strides = [1, 1]} : vector<16x128xf32> to vector<16x32xf32>
    %10 = vector.extract_strided_slice %6 {offsets = [0, 96], sizes = [16, 32], strides = [1, 1]} : vector<16x128xf32> to vector<16x32xf32>
    %c0_7 = arith.constant 0 : index
    %c0_8 = arith.constant 0 : index
    %11 = vector.load %arg3[%c0_7, %c0_8] : memref<1x32xf32, #tpu.memory_space<vmem>>, vector<1x32xf32>
    %c0_9 = arith.constant 0 : index
    %c0_10 = arith.constant 0 : index
    %12 = vector.load %arg4[%c0_9, %c0_10] : memref<1x32xf32, #tpu.memory_space<vmem>>, vector<1x32xf32>
    %cst_11 = arith.constant dense<0.000000e+00> : vector<16xf32>
    %13 = vector.multi_reduction <add>, %0, %cst_11 [1] : vector<16x32xf32> to vector<16xf32>
    %14 = vector.shape_cast %13 : vector<16xf32> to vector<16x1xf32>
    %cst_12 = arith.constant 3.200000e+01 : f32
    %15 = vector.broadcast %cst_12 : f32 to vector<16x1xf32>
    %16 = arith.divf %14, %15 : vector<16x1xf32>
    %17 = vector.broadcast %16 : vector<16x1xf32> to vector<16x32xf32>
    %18 = arith.subf %0, %17 : vector<16x32xf32>
    %19 = arith.mulf %18, %18 : vector<16x32xf32>
    %cst_13 = arith.constant dense<0.000000e+00> : vector<16xf32>
    %20 = vector.multi_reduction <add>, %19, %cst_13 [1] : vector<16x32xf32> to vector<16xf32>
    %21 = vector.shape_cast %20 : vector<16xf32> to vector<16x1xf32>
    %cst_14 = arith.constant 3.200000e+01 : f32
    %22 = vector.broadcast %cst_14 : f32 to vector<16x1xf32>
    %23 = arith.divf %21, %22 : vector<16x1xf32>
    %24 = vector.broadcast %16 : vector<16x1xf32> to vector<16x32xf32>
    %25 = arith.subf %0, %24 : vector<16x32xf32>
    %cst_15 = arith.constant 9.99999974E-6 : f32
    %26 = vector.broadcast %cst_15 : f32 to vector<16x1xf32>
    %27 = arith.addf %23, %26 : vector<16x1xf32>
    %28 = math.rsqrt %27 : vector<16x1xf32>
    %29 = vector.broadcast %28 : vector<16x1xf32> to vector<16x32xf32>
    %30 = arith.mulf %25, %29 : vector<16x32xf32>
    %31 = vector.broadcast %11 : vector<1x32xf32> to vector<16x32xf32>
    %32 = arith.mulf %30, %31 : vector<16x32xf32>
    %33 = vector.broadcast %12 : vector<1x32xf32> to vector<16x32xf32>
    %34 = arith.addf %32, %33 : vector<16x32xf32>
    %cst_16 = arith.constant 1.000000e+00 : f32
    %35 = vector.broadcast %cst_16 : f32 to vector<16x32xf32>
    %36 = arith.addf %35, %8 : vector<16x32xf32>
    %37 = arith.mulf %34, %36 : vector<16x32xf32>
    %38 = arith.addf %37, %7 : vector<16x32xf32>
    %c0_17 = arith.constant 0 : index
    %c0_18 = arith.constant 0 : index
    %39 = vector.load %arg9[%c0_17, %c0_18] : memref<32x96xf32, #tpu.memory_space<vmem>>, vector<32x96xf32>
    %cst_19 = arith.constant dense<0.000000e+00> : vector<16x96xf32>
    %40 = tpu.matmul %38, %39, %cst_19 {dimension_numbers = #tpu.dot_dimension_numbers<[1], [0], [0], [1], [0, 0, 1, 1], [], []>} : vector<16x32xf32>, vector<32x96xf32>, vector<16x96xf32> -> vector<16x96xf32>
    %c0_20 = arith.constant 0 : index
    %c0_21 = arith.constant 0 : index
    %41 = vector.load %arg10[%c0_20, %c0_21] : memref<1x96xf32, #tpu.memory_space<vmem>>, vector<1x96xf32>
    %42 = vector.broadcast %41 : vector<1x96xf32> to vector<16x96xf32>
    %43 = arith.addf %40, %42 : vector<16x96xf32>
    %44 = vector.extract_strided_slice %43 {offsets = [0, 0], sizes = [16, 32], strides = [1, 1]} : vector<16x96xf32> to vector<16x32xf32>
    %45 = vector.extract_strided_slice %43 {offsets = [0, 32], sizes = [16, 32], strides = [1, 1]} : vector<16x96xf32> to vector<16x32xf32>
    %46 = vector.extract_strided_slice %43 {offsets = [0, 64], sizes = [16, 32], strides = [1, 1]} : vector<16x96xf32> to vector<16x32xf32>
    %47 = vector.extract_strided_slice %45 {offsets = [0, 0], sizes = [16, 8], strides = [1, 1]} : vector<16x32xf32> to vector<16x8xf32>
    %48 = vector.shape_cast %47 : vector<16x8xf32> to vector<2x8x8xf32>
    %49 = vector.extract_strided_slice %45 {offsets = [0, 8], sizes = [16, 8], strides = [1, 1]} : vector<16x32xf32> to vector<16x8xf32>
    %50 = vector.shape_cast %49 : vector<16x8xf32> to vector<2x8x8xf32>
    %51 = vector.extract_strided_slice %45 {offsets = [0, 16], sizes = [16, 8], strides = [1, 1]} : vector<16x32xf32> to vector<16x8xf32>
    %52 = vector.shape_cast %51 : vector<16x8xf32> to vector<2x8x8xf32>
    %53 = vector.extract_strided_slice %45 {offsets = [0, 24], sizes = [16, 8], strides = [1, 1]} : vector<16x32xf32> to vector<16x8xf32>
    %54 = vector.shape_cast %53 : vector<16x8xf32> to vector<2x8x8xf32>
    %55 = tpu.concatenate %48, %50, %52, %54 in 0 : vector<2x8x8xf32>, vector<2x8x8xf32>, vector<2x8x8xf32>, vector<2x8x8xf32> -> vector<8x8x8xf32>
    %56 = vector.extract_strided_slice %44 {offsets = [0, 0], sizes = [16, 8], strides = [1, 1]} : vector<16x32xf32> to vector<16x8xf32>
    %57 = vector.shape_cast %56 : vector<16x8xf32> to vector<2x8x8xf32>
    %58 = vector.extract_strided_slice %44 {offsets = [0, 8], sizes = [16, 8], strides = [1, 1]} : vector<16x32xf32> to vector<16x8xf32>
    %59 = vector.shape_cast %58 : vector<16x8xf32> to vector<2x8x8xf32>
    %60 = vector.extract_strided_slice %44 {offsets = [0, 16], sizes = [16, 8], strides = [1, 1]} : vector<16x32xf32> to vector<16x8xf32>
    %61 = vector.shape_cast %60 : vector<16x8xf32> to vector<2x8x8xf32>
    %62 = vector.extract_strided_slice %44 {offsets = [0, 24], sizes = [16, 8], strides = [1, 1]} : vector<16x32xf32> to vector<16x8xf32>
    %63 = vector.shape_cast %62 : vector<16x8xf32> to vector<2x8x8xf32>
    %64 = tpu.concatenate %57, %59, %61, %63 in 0 : vector<2x8x8xf32>, vector<2x8x8xf32>, vector<2x8x8xf32>, vector<2x8x8xf32> -> vector<8x8x8xf32>
    %65 = vector.extract_strided_slice %46 {offsets = [0, 0], sizes = [16, 8], strides = [1, 1]} : vector<16x32xf32> to vector<16x8xf32>
    %66 = vector.shape_cast %65 : vector<16x8xf32> to vector<2x8x8xf32>
    %67 = vector.extract_strided_slice %46 {offsets = [0, 8], sizes = [16, 8], strides = [1, 1]} : vector<16x32xf32> to vector<16x8xf32>
    %68 = vector.shape_cast %67 : vector<16x8xf32> to vector<2x8x8xf32>
    %69 = vector.extract_strided_slice %46 {offsets = [0, 16], sizes = [16, 8], strides = [1, 1]} : vector<16x32xf32> to vector<16x8xf32>
    %70 = vector.shape_cast %69 : vector<16x8xf32> to vector<2x8x8xf32>
    %71 = vector.extract_strided_slice %46 {offsets = [0, 24], sizes = [16, 8], strides = [1, 1]} : vector<16x32xf32> to vector<16x8xf32>
    %72 = vector.shape_cast %71 : vector<16x8xf32> to vector<2x8x8xf32>
    %73 = tpu.concatenate %66, %68, %70, %72 in 0 : vector<2x8x8xf32>, vector<2x8x8xf32>, vector<2x8x8xf32>, vector<2x8x8xf32> -> vector<8x8x8xf32>
    %74 = tpu.iota {dimensions = array<i32: 0>} : vector<8x8xi32>
    %75 = tpu.iota {dimensions = array<i32: 1>} : vector<8x8xi32>
    %76 = arith.cmpi sle, %75, %74 : vector<8x8xi32>
    %77 = vector.shape_cast %76 : vector<8x8xi1> to vector<1x8x8xi1>
    "tpu.trace_start"() <{level = 10 : i32, message = "btd,bsd->bts"}> : () -> ()
    %cst_22 = arith.constant dense<0.000000e+00> : vector<8x8x8xf32>
    %78 = tpu.matmul %55, %64, %cst_22 {dimension_numbers = #tpu.dot_dimension_numbers<[2], [2], [1], [1], [0, 0, 0, 1, 1, 1], [0], [0]>} : vector<8x8x8xf32>, vector<8x8x8xf32>, vector<8x8x8xf32> -> vector<8x8x8xf32>
    "tpu.trace_stop"() : () -> ()
    %cst_23 = arith.constant 0.353553385 : f32
    %79 = vector.broadcast %cst_23 : f32 to vector<8x8x8xf32>
    %80 = arith.mulf %78, %79 : vector<8x8x8xf32>
    %cst_24 = arith.constant -1.000000e+30 : f32
    %81 = vector.shape_cast %77 : vector<1x8x8xi1> to vector<1x8x8xi1>
    %82 = vector.broadcast %81 : vector<1x8x8xi1> to vector<8x8x8xi1>
    %83 = vector.broadcast %cst_24 : f32 to vector<8x8x8xf32>
    %84 = arith.select %82, %80, %83 : vector<8x8x8xi1>, vector<8x8x8xf32>
    %cst_25 = arith.constant dense<0xFF800000> : vector<8x8xf32>
    %85 = vector.multi_reduction <maximumf>, %84, %cst_25 [2] : vector<8x8x8xf32> to vector<8x8xf32>
    %86 = vector.shape_cast %85 : vector<8x8xf32> to vector<8x8x1xf32>
    %87 = vector.broadcast %86 : vector<8x8x1xf32> to vector<8x8x8xf32>
    %88 = arith.subf %84, %87 : vector<8x8x8xf32>
    %89 = math.exp %88 : vector<8x8x8xf32>
    %cst_26 = arith.constant dense<0.000000e+00> : vector<8x8xf32>
    %90 = vector.multi_reduction <add>, %89, %cst_26 [2] : vector<8x8x8xf32> to vector<8x8xf32>
    %91 = vector.shape_cast %90 : vector<8x8xf32> to vector<8x8x1xf32>
    %92 = tpu.reciprocal %91 : vector<8x8x1xf32> -> vector<8x8x1xf32>
    %93 = vector.broadcast %92 : vector<8x8x1xf32> to vector<8x8x8xf32>
    %94 = arith.mulf %89, %93 : vector<8x8x8xf32>
    "tpu.trace_start"() <{level = 10 : i32, message = "bts,bsd->btd"}> : () -> ()
    %cst_27 = arith.constant dense<0.000000e+00> : vector<8x8x8xf32>
    %95 = tpu.matmul %94, %73, %cst_27 {dimension_numbers = #tpu.dot_dimension_numbers<[2], [1], [1], [2], [0, 0, 0, 1, 1, 2], [0], [0]>} : vector<8x8x8xf32>, vector<8x8x8xf32>, vector<8x8x8xf32> -> vector<8x8x8xf32>
    "tpu.trace_stop"() : () -> ()
    %96 = vector.extract_strided_slice %95 {offsets = [0, 0, 0], sizes = [2, 8, 8], strides = [1, 1, 1]} : vector<8x8x8xf32> to vector<2x8x8xf32>
    %97 = vector.shape_cast %96 : vector<2x8x8xf32> to vector<16x8xf32>
    %98 = vector.extract_strided_slice %95 {offsets = [2, 0, 0], sizes = [2, 8, 8], strides = [1, 1, 1]} : vector<8x8x8xf32> to vector<2x8x8xf32>
    %99 = vector.shape_cast %98 : vector<2x8x8xf32> to vector<16x8xf32>
    %100 = vector.extract_strided_slice %95 {offsets = [4, 0, 0], sizes = [2, 8, 8], strides = [1, 1, 1]} : vector<8x8x8xf32> to vector<2x8x8xf32>
    %101 = vector.shape_cast %100 : vector<2x8x8xf32> to vector<16x8xf32>
    %102 = vector.extract_strided_slice %95 {offsets = [6, 0, 0], sizes = [2, 8, 8], strides = [1, 1, 1]} : vector<8x8x8xf32> to vector<2x8x8xf32>
    %103 = vector.shape_cast %102 : vector<2x8x8xf32> to vector<16x8xf32>
    %104 = tpu.concatenate %97, %99, %101, %103 in 1 : vector<16x8xf32>, vector<16x8xf32>, vector<16x8xf32>, vector<16x8xf32> -> vector<16x32xf32>
    %105 = arith.addf %0, %104 : vector<16x32xf32>
    %c0_28 = arith.constant 0 : index
    %c0_29 = arith.constant 0 : index
    %106 = vector.load %arg5[%c0_28, %c0_29] : memref<1x32xf32, #tpu.memory_space<vmem>>, vector<1x32xf32>
    %c0_30 = arith.constant 0 : index
    %c0_31 = arith.constant 0 : index
    %107 = vector.load %arg6[%c0_30, %c0_31] : memref<1x32xf32, #tpu.memory_space<vmem>>, vector<1x32xf32>
    %cst_32 = arith.constant dense<0.000000e+00> : vector<16xf32>
    %108 = vector.multi_reduction <add>, %105, %cst_32 [1] : vector<16x32xf32> to vector<16xf32>
    %109 = vector.shape_cast %108 : vector<16xf32> to vector<16x1xf32>
    %cst_33 = arith.constant 3.200000e+01 : f32
    %110 = vector.broadcast %cst_33 : f32 to vector<16x1xf32>
    %111 = arith.divf %109, %110 : vector<16x1xf32>
    %112 = vector.broadcast %111 : vector<16x1xf32> to vector<16x32xf32>
    %113 = arith.subf %105, %112 : vector<16x32xf32>
    %114 = arith.mulf %113, %113 : vector<16x32xf32>
    %cst_34 = arith.constant dense<0.000000e+00> : vector<16xf32>
    %115 = vector.multi_reduction <add>, %114, %cst_34 [1] : vector<16x32xf32> to vector<16xf32>
    %116 = vector.shape_cast %115 : vector<16xf32> to vector<16x1xf32>
    %cst_35 = arith.constant 3.200000e+01 : f32
    %117 = vector.broadcast %cst_35 : f32 to vector<16x1xf32>
    %118 = arith.divf %116, %117 : vector<16x1xf32>
    %119 = vector.broadcast %111 : vector<16x1xf32> to vector<16x32xf32>
    %120 = arith.subf %105, %119 : vector<16x32xf32>
    %cst_36 = arith.constant 9.99999974E-6 : f32
    %121 = vector.broadcast %cst_36 : f32 to vector<16x1xf32>
    %122 = arith.addf %118, %121 : vector<16x1xf32>
    %123 = math.rsqrt %122 : vector<16x1xf32>
    %124 = vector.broadcast %123 : vector<16x1xf32> to vector<16x32xf32>
    %125 = arith.mulf %120, %124 : vector<16x32xf32>
    %126 = vector.broadcast %106 : vector<1x32xf32> to vector<16x32xf32>
    %127 = arith.mulf %125, %126 : vector<16x32xf32>
    %128 = vector.broadcast %107 : vector<1x32xf32> to vector<16x32xf32>
    %129 = arith.addf %127, %128 : vector<16x32xf32>
    %cst_37 = arith.constant 1.000000e+00 : f32
    %130 = vector.broadcast %cst_37 : f32 to vector<16x32xf32>
    %131 = arith.addf %130, %10 : vector<16x32xf32>
    %132 = arith.mulf %129, %131 : vector<16x32xf32>
    %133 = arith.addf %132, %9 : vector<16x32xf32>
    %c0_38 = arith.constant 0 : index
    %c0_39 = arith.constant 0 : index
    %134 = vector.load %arg11[%c0_38, %c0_39] : memref<32x128xf32, #tpu.memory_space<vmem>>, vector<32x128xf32>
    %cst_40 = arith.constant dense<0.000000e+00> : vector<16x128xf32>
    %135 = tpu.matmul %133, %134, %cst_40 {dimension_numbers = #tpu.dot_dimension_numbers<[1], [0], [0], [1], [0, 0, 1, 1], [], []>} : vector<16x32xf32>, vector<32x128xf32>, vector<16x128xf32> -> vector<16x128xf32>
    %c0_41 = arith.constant 0 : index
    %c0_42 = arith.constant 0 : index
    %136 = vector.load %arg12[%c0_41, %c0_42] : memref<1x128xf32, #tpu.memory_space<vmem>>, vector<1x128xf32>
    %137 = vector.broadcast %136 : vector<1x128xf32> to vector<16x128xf32>
    %138 = arith.addf %135, %137 : vector<16x128xf32>
    %cst_43 = arith.constant 5.000000e-01 : f32
    %139 = vector.broadcast %cst_43 : f32 to vector<16x128xf32>
    %140 = arith.mulf %139, %138 : vector<16x128xf32>
    %cst_44 = arith.constant 0.707106769 : f32
    %141 = vector.broadcast %cst_44 : f32 to vector<16x128xf32>
    %142 = arith.mulf %138, %141 : vector<16x128xf32>
    %143 = math.erf %142 : vector<16x128xf32>
    %cst_45 = arith.constant 1.000000e+00 : f32
    %144 = vector.broadcast %cst_45 : f32 to vector<16x128xf32>
    %145 = arith.addf %144, %143 : vector<16x128xf32>
    %146 = arith.mulf %140, %145 : vector<16x128xf32>
    %c0_46 = arith.constant 0 : index
    %c0_47 = arith.constant 0 : index
    %147 = vector.load %arg13[%c0_46, %c0_47] : memref<128x32xf32, #tpu.memory_space<vmem>>, vector<128x32xf32>
    %cst_48 = arith.constant dense<0.000000e+00> : vector<16x32xf32>
    %148 = tpu.matmul %146, %147, %cst_48 {dimension_numbers = #tpu.dot_dimension_numbers<[1], [0], [0], [1], [0, 0, 1, 1], [], []>} : vector<16x128xf32>, vector<128x32xf32>, vector<16x32xf32> -> vector<16x32xf32>
    %c0_49 = arith.constant 0 : index
    %c0_50 = arith.constant 0 : index
    %149 = vector.load %arg14[%c0_49, %c0_50] : memref<1x32xf32, #tpu.memory_space<vmem>>, vector<1x32xf32>
    %150 = vector.broadcast %149 : vector<1x32xf32> to vector<16x32xf32>
    %151 = arith.addf %148, %150 : vector<16x32xf32>
    %cst_51 = arith.constant 5.000000e-01 : f32
    %152 = vector.broadcast %cst_51 : f32 to vector<16x32xf32>
    %153 = arith.mulf %152, %151 : vector<16x32xf32>
    %cst_52 = arith.constant 0.707106769 : f32
    %154 = vector.broadcast %cst_52 : f32 to vector<16x32xf32>
    %155 = arith.mulf %151, %154 : vector<16x32xf32>
    %156 = math.erf %155 : vector<16x32xf32>
    %cst_53 = arith.constant 1.000000e+00 : f32
    %157 = vector.broadcast %cst_53 : f32 to vector<16x32xf32>
    %158 = arith.addf %157, %156 : vector<16x32xf32>
    %159 = arith.mulf %153, %158 : vector<16x32xf32>
    %160 = arith.addf %105, %159 : vector<16x32xf32>
    %c0_54 = arith.constant 0 : index
    %c0_55 = arith.constant 0 : index
    %161 = vector.load %arg15[%c0_54, %c0_55] : memref<16x32xf32, #tpu.memory_space<vmem>>, vector<16x32xf32>
    tpu.vector_store %arg15[%c0_54, %c0_55], %160 {strides = array<i32>} : memref<16x32xf32, #tpu.memory_space<vmem>>, vector<16x32xf32>,
    return
  }
  func.func @transform_0(%arg0: i32) -> (i32, i32) {
    %c0_i32 = arith.constant 0 : i32
    %c0_i32_0 = arith.constant 0 : i32
    return %arg0, %c0_i32 : i32, i32
  }
  func.func @transform_1(%arg0: i32) -> (i32, i32) {
    %c0_i32 = arith.constant 0 : i32
    %c0_i32_0 = arith.constant 0 : i32
    return %arg0, %c0_i32 : i32, i32
  }
  func.func @transform_2(%arg0: i32) -> (i32, i32) {
    %c0_i32 = arith.constant 0 : i32
    %c0_i32_0 = arith.constant 0 : i32
    %c0_i32_1 = arith.constant 0 : i32
    return %c0_i32, %c0_i32_0 : i32, i32
  }
  func.func @transform_3(%arg0: i32) -> (i32, i32) {
    %c0_i32 = arith.constant 0 : i32
    %c0_i32_0 = arith.constant 0 : i32
    %c0_i32_1 = arith.constant 0 : i32
    return %c0_i32, %c0_i32_0 : i32, i32
  }
  func.func @transform_4(%arg0: i32) -> (i32, i32) {
    %c0_i32 = arith.constant 0 : i32
    %c0_i32_0 = arith.constant 0 : i32
    %c0_i32_1 = arith.constant 0 : i32
    return %c0_i32, %c0_i32_0 : i32, i32
  }
  func.func @transform_5(%arg0: i32) -> (i32, i32) {
    %c0_i32 = arith.constant 0 : i32
    %c0_i32_0 = arith.constant 0 : i32
    %c0_i32_1 = arith.constant 0 : i32
    return %c0_i32, %c0_i32_0 : i32, i32
  }
  func.func @transform_6(%arg0: i32) -> (i32, i32) {
    %c0_i32 = arith.constant 0 : i32
    %c0_i32_0 = arith.constant 0 : i32
    %c0_i32_1 = arith.constant 0 : i32
    return %c0_i32, %c0_i32_0 : i32, i32
  }
  func.func @transform_7(%arg0: i32) -> (i32, i32) {
    %c0_i32 = arith.constant 0 : i32
    %c0_i32_0 = arith.constant 0 : i32
    %c0_i32_1 = arith.constant 0 : i32
    return %c0_i32, %c0_i32_0 : i32, i32
  }
  func.func @transform_8(%arg0: i32) -> (i32, i32) {
    %c0_i32 = arith.constant 0 : i32
    %c0_i32_0 = arith.constant 0 : i32
    %c0_i32_1 = arith.constant 0 : i32
    return %c0_i32, %c0_i32_0 : i32, i32
  }
  func.func @transform_9(%arg0: i32) -> (i32, i32) {
    %c0_i32 = arith.constant 0 : i32
    %c0_i32_0 = arith.constant 0 : i32
    %c0_i32_1 = arith.constant 0 : i32
    return %c0_i32, %c0_i32_0 : i32, i32
  }
  func.func @transform_10(%arg0: i32) -> (i32, i32) {
    %c0_i32 = arith.constant 0 : i32
    %c0_i32_0 = arith.constant 0 : i32
    %c0_i32_1 = arith.constant 0 : i32
    return %c0_i32, %c0_i32_0 : i32, i32
  }
  func.func @transform_11(%arg0: i32) -> (i32, i32) {
    %c0_i32 = arith.constant 0 : i32
    %c0_i32_0 = arith.constant 0 : i32
    %c0_i32_1 = arith.constant 0 : i32
    return %c0_i32, %c0_i32_0 : i32, i32
  }
  func.func @transform_12(%arg0: i32) -> (i32, i32) {
    %c0_i32 = arith.constant 0 : i32
    %c0_i32_0 = arith.constant 0 : i32
    %c0_i32_1 = arith.constant 0 : i32
    return %c0_i32, %c0_i32_0 : i32, i32
  }
  func.func @transform_13(%arg0: i32) -> (i32, i32) {
    %c0_i32 = arith.constant 0 : i32
    %c0_i32_0 = arith.constant 0 : i32
    %c0_i32_1 = arith.constant 0 : i32
    return %c0_i32, %c0_i32_0 : i32, i32
  }
  func.func @transform_14(%arg0: i32) -> (i32, i32) {
    %c0_i32 = arith.constant 0 : i32
    %c0_i32_0 = arith.constant 0 : i32
    return %arg0, %c0_i32 : i32, i32
  }
}

</mosaic_0001>

<bundles_post_ra>
// kernel: tpu_custom_call.1
= control target key start
LH: loop header
LB: loop body
LE: loop exit
PB: predicated region body
PF: predicated region fallthrough
CT: control target
= control target key end

     0   :  { %vm63_vm0 = vcmask 261120   ;;  %s2761_s0 = inlined_call_operand.vmem [shape: f32[16,32], index: 0, kind: input, shape index: {}]   ;;  %s2762_s1 = inlined_call_operand.vmem [shape: f32[16,32], index: 1, kind: input, shape index: {}]   ;;  %s2763_s2 = inlined_call_operand.vmem [shape: f32[1,32], index: 2, kind: input, shape index: {}]   ;;  %s2764_s3 = inlined_call_operand.vmem [shape: f32[1,32], index: 3, kind: input, shape index: {}]   ;;  %s2765_s4 = inlined_call_operand.vmem [shape: f32[1,32], index: 4, kind: input, shape index: {}]   ;;  %s2766_s5 = inlined_call_operand.vmem [shape: f32[1,32], index: 5, kind: input, shape index: {}]   ;;  %s2767_s6 = inlined_call_operand.vmem [shape: f32[32,128], index: 6, kind: input, shape index: {}]   ;;  %s2768_s7 = inlined_call_operand.vmem [shape: f32[1,128], index: 7, kind: input, shape index: {}]   ;;  %s2769_s8 = inlined_call_operand.vmem [shape: f32[32,96], index: 8, kind: input, shape index: {}]   ;;  %s2770_s9 = inlined_call_operand.vmem [shape: f32[1,96], index: 9, kind: input, shape index: {}]   ;;  %s2771_s10 = inlined_call_operand.vmem [shape: f32[32,128], index: 10, kind: input, shape index: {}]   ;;  %s2772_s11 = inlined_call_operand.vmem [shape: f32[1,128], index: 11, kind: input, shape index: {}]   ;;  %s2773_s12 = inlined_call_operand.vmem [shape: f32[128,32], index: 12, kind: input, shape index: {}]   ;;  %s2774_s13 = inlined_call_operand.vmem [shape: f32[1,32], index: 13, kind: input, shape index: {}]   ;;  %s2775_s14 = inlined_call_operand.hbm [shape: f32[16,32], index: 14, kind: output, shape index: {}]  }
   0x1   :  { %v55_v0 = vld [vmem:[%s2767_s6 + $0x18] sm:$0xff]  ;;  %v2395_v1 = vld [vmem:[%s2761_s0] sm:$0xff]  ;;  %v54_v2 = vld [vmem:[%s2767_s6 + $0x10] sm:$0xff] }
   0x2   :  { %2070 = vmatprep.subr.mxu0 %v55_v0  ;;  %v147_v3 = vsel %vm63_vm0, %v2395_v1, 0.0  ;;  %v2405_v4 = vld [vmem:[%s2761_s0 + $0x8] sm:$0xff]  ;;  %v50_v6 = vld [vmem:[%s2762_s1] sm:$0xff] }
   0x3   :  { %2071 = vmatpush3.msra.mxu0 %v55_v0  ;;  %148 = vadd.xlane.f32.xlu0 %v147_v3  ;;  %v53_v5 = vld [vmem:[%s2767_s6 + $0x8] sm:$0xff] }
   0x4   :  { %19 = vsyncpa [#allocation3], 0  ;;  %2072 = vmatprep.subr.mxu0 %v54_v2  ;;  %v150_v7 = vsel %vm63_vm0, %v2405_v4, 0.0  ;;  %2078 = vmatprep.mubr.msk.f32.mxu0 %vm63_vm0, %v50_v6  ;;  %v52_v8 = vld [vmem:[%s2767_s6] sm:$0xff]  ;;  %v51_v9 = vld [vmem:[%s2762_s1 + $0x8] sm:$0xff]  ;;  %s2301_s20 = smov 96  }
   0x5   :  { %2073 = vmatpush3.msra.mxu0 %v54_v2  ;;  %v207_v20 = vld [vmem:[%s2769_s8 + $0x18] sm:$0xff]  ;;  %v206_v21 = vld [vmem:[%s2769_s8 + $0x10] sm:$0xff]  ;;  %v205_v22 = vld [vmem:[%s2769_s8 + $0x8] sm:$0xff]  ;;  %v2302_v53 = vmov 0.0   ;;  %vm2303_vm1 = vmmov 0   ;;  %vm317_vm2 = vcmask 64512  }
   0x6   :  { %2074 = vmatprep.subr.mxu0 %v53_v5  ;;  %v204_v23 = vld [vmem:[%s2769_s8] sm:$0xff]  ;;  %2107 = vmatprep.subr.mxu1 %v2302_v53  ;;  %s2304_s23 = smov 112   ;;  %s2305_s24 = smov 120   ;;  %vm1664_vm4 = vcmask 130048   ;;  %vm1667_vm5 = vcmask 195584  }
   0x7   :  { %2075 = vmatpush3.msra.mxu0 %v53_v5  ;;  %151 = vadd.xlane.f32.xlu0 %v150_v7  ;;  %v1964_v24 = vld [vmem:[%s2768_s7] ss:$0 sm:$0xff]  ;;  %s2306_s0 = smov 104   ;;  %s2308_s25 = smov 8  }
   0x8   :  { %2076 = vmatprep.subr.mxu0 %v52_v8  ;;  %v1967_v41 = vld [vmem:[%s2763_s2] ss:$0 sm:$0xff]  ;;  %2109 = vmatprep.mubr.msk.f32.mxu1 %vm2303_vm1, %v2302_v53  ;;  %s2309_s26 = smov 16   ;;  %s2310_s27 = smov 24  }
   0x9   :  { %2077 = vmatpush3.msra.mxu0 %v52_v8  ;;  %v1968_v44 = vld [vmem:[%s2764_s3] ss:$0 sm:$0xff]  ;;  %s2311_s1 = smov 32  }
   0xa   :  { %2079 = vmatmul.mubr.msk.f32.vlgmr.msra.gmra.mxu0 %vm63_vm0, %v51_v9  ;;  %2081 = vmatprep.subr.mxu0 %v207_v20  ;;  %v1969_v55 = vld [vmem:[%s2770_s9] ss:$0 sm:$0xff]  ;;  %s2307_s9 = smov 64  }
   0xb   :  { %2082 = vmatpush3.msra.mxu0 %v207_v20 }
   0xc   :  { %2083 = vmatprep.subr.mxu0 %v206_v21 }
   0xd   :  { %2084 = vmatpush3.msra.mxu0 %v206_v21 }
   0xe   :  { %2085 = vmatprep.subr.mxu0 %v205_v22 }
   0xf   :  { %2086 = vmatpush3.msra.mxu0 %v205_v22 }
  0x10   :  { %2087 = vmatprep.subr.mxu0 %v204_v23 }
  0x11   :  { %2088 = vmatpush3.msra.mxu0 %v204_v23 }
  0x12   :  { %2092 = vmatprep.subr.mxu0 %v2302_v53 }
  0x8c   :  { %v149_v10 = vpop.xlane.xlu0 %148 }
  0x8d   :  { %v154_v11 = vmul.f32 0.03125, %v149_v10 }
  0x8f   :  { %v156_v12 = vsub.f32 %v2395_v1, %v154_v11  ;;  %v310_v11 = vlaneseq }
  0x90   :  { %v152_v13 = vpop.xlane.xlu0 %151 }
  0x91   :  { %v155_v14 = vmul.f32 0.03125, %v152_v13  ;;  %v158_v15 = vmul.f32 %v156_v12, %v156_v12  ;;  %v313_v13 = vand.u32 127, %v310_v11 }
  0x93   :  { %v157_v16 = vsub.f32 %v2405_v4, %v155_v14  ;;  %v160_v17 = vsel %vm63_vm0, %v158_v15, 0.0 }
  0x94   :  { %161 = vadd.xlane.f32.xlu1 %v160_v17 }
  0x95   :  { %v159_v18 = vmul.f32 %v157_v16, %v157_v16 }
  0x97   :  { %v163_v19 = vsel %vm63_vm0, %v159_v18, 0.0 }
  0x98   :  { %164 = vadd.xlane.f32.xlu1 %v163_v19 }
  0xca   :  { %v2080_v25 = vpop.f32.mrf.mxu0 }
  0xcb   :  { %v2442_v26 = vadd.f32 %v2080_v25, %v1964_v24 }
  0xcc   :  { %v136_v27 = vpop.f32.mrf.mxu0 }
  0xcd   :  { %v2444_v28 = vadd.f32 %v1964_v24, %v136_v27  ;;  %v2447_v29 = vadd.f32 1.0, %v2442_v26 }
  0xcf   :  { %196 = vrot.lane.b32.xlu1 %v2447_v29, %s2301_s20  ;;  %v2452_v30 = vadd.f32 1.0, %v2444_v28 }
  0xd1   :  { %194 = vrot.lane.b32.xlu0 %v2452_v30, %s2301_s20 }
 0x11d   :  { %v162_v31 = vpop.xlane.xlu1 %161 }
 0x11e   :  { %v166_v33 = vmul.f32 0.03125, %v162_v31 }
 0x120   :  { %v168_v36 = vadd.f32 1e-05, %v166_v33 }
 0x121   :  { %v165_v32 = vpop.xlane.xlu1 %164 }
 0x122   :  { %v167_v34 = vmul.f32 0.03125, %v165_v32 }
 0x124   :  { %v169_v35 = vadd.f32 1e-05, %v167_v34 }
 0x126   :  { %2231 = vrsqrt.f32 %v169_v35 }
 0x127   :  { %2233 = vrsqrt.f32 %v168_v36 }
 0x133   :  { %v2232_v37 = vpop.eup %2231 }
 0x134   :  { %v2234_v38 = vpop.eup %2233  ;;  %v173_v39 = vmul.f32 %v2232_v37, %v157_v16 }
 0x135   :  { %v172_v40 = vmul.f32 %v2234_v38, %v156_v12  ;;  %v311_v12 = vshrl.u32 %v310_v11, 7 }
 0x136   :  { %v181_v42 = vmul.f32 %v1967_v41, %v173_v39 }
 0x137   :  { %v180_v43 = vmul.f32 %v1967_v41, %v172_v40  ;;  %vm2561_vm3 = vcmp.le.s32.totalorder %v313_v13, %v311_v12 }
 0x138   :  { %v189_v45 = vadd.f32 %v1968_v44, %v181_v42 }
 0x139   :  { %v188_v47 = vadd.f32 %v1968_v44, %v180_v43 }
 0x141   :  { %v197_v46 = vpop.permute.xlu1 %196 }
 0x142   :  { %v201_v48 = vmul.f32 %v197_v46, %v189_v45 }
 0x143   :  { %v195_v49 = vpop.permute.xlu0 %194 }
 0x144   :  { %v200_v50 = vmul.f32 %v195_v49, %v188_v47  ;;  %v203_v52 = vadd.f32 %v201_v48, %v2442_v26 }
 0x146   :  { %v202_v51 = vadd.f32 %v200_v50, %v2444_v28 }
 0x148   :  { %2089 = vmatprep.mubr.msk.f32.mxu0 %vm63_vm0, %v202_v51 }
 0x149   :  { %2090 = vmatmul.mubr.msk.f32.vlgmr.msra.gmra.mxu0 %vm63_vm0, %v203_v52 }
 0x14a   :  { %2094 = vmatprep.mubr.msk.f32.mxu0 %vm2303_vm1, %v2302_v53 }
 0x209   :  { %v2091_v54 = vpop.f32.mrf.mxu0 }
 0x20a   :  { %v2481_v58 = vadd.f32 %v2091_v54, %v1969_v55 }
 0x20b   :  { %v287_v56 = vpop.f32.mrf.mxu0 }
 0x20c   :  { %v2475_v57 = vadd.f32 %v1969_v55, %v287_v56 }
 0x20e   :  { %302 = vrot.lane.b32.xlu0 %v2475_v57, %s2304_s23  ;;  %298 = vrot.lane.b32.xlu1 %v2475_v57, %s2305_s24 }
 0x20f   :  { %2093 = vmatpush3.xpose.msk.msra.mxu0 %vm317_vm2, %v2475_v57 }
 0x210   :  { %2097 = vmatprep.subr.mxu0 %v2302_v53 }
 0x212   :  { %306 = vrot.lane.b32.xlu0 %v2475_v57, %s2306_s0  ;;  %300 = vrot.lane.b32.xlu1 %v2481_v58, %s2305_s24 }
 0x216   :  { %315 = vrot.lane.b32.xlu0 %v2475_v57, %s2301_s20  ;;  %304 = vrot.lane.b32.xlu1 %v2481_v58, %s2304_s23 }
 0x21a   :  { %308 = vrot.lane.b32.xlu1 %v2481_v58, %s2306_s0 }
 0x21e   :  { %392 = vrot.lane.b32.xlu1 %v2481_v58, %s2301_s20 }
 0x280   :  { %v2492_v59 = vpop.permute.xlu0 %302  ;;  %v2494_v60 = vpop.permute.xlu1 %298 }
 0x281   :  { %468 = vrot.lane.b32.xlu0 %v2494_v60, %s2301_s20 }
 0x284   :  { %v2498_v61 = vpop.permute.xlu0 %306  ;;  %v2500_v62 = vpop.permute.xlu1 %300 }
 0x285   :  { %620 = vrot.lane.b32.xlu0 %v2492_v59, %s2301_s20  ;;  %2108 = vmatpush3.xpose.msk.msra.mxu1 %vm317_vm2, %v2500_v62 }
 0x286   :  { %544 = vrot.lane.b32.xlu1 %v2500_v62, %s2301_s20  ;;  %2117 = vmatprep.subr.mxu1 %v2302_v53 }
 0x288   :  { %v316_v63 = vpop.permute.xlu0 %315  ;;  %v2509_v0 = vpop.permute.xlu1 %304 }
 0x289   :  { %772 = vrot.lane.b32.xlu0 %v2498_v61, %s2301_s20  ;;  %2095 = vmatmul.mubr.msk.f32.vlgmr.msra.gmra.mxu0 %vm317_vm2, %v316_v63 }
 0x28a   :  { %696 = vrot.lane.b32.xlu1 %v2509_v0, %s2301_s20  ;;  %2098 = vmatpush3.xpose.msk.msra.mxu0 %vm317_vm2, %v2481_v58 }
 0x28b   :  { %2099 = vmatprep.mubr.msk.f32.mxu0 %vm2303_vm1, %v2302_v53  ;;  %2102 = vmatprep.subr.mxu0 %v2302_v53 }
 0x28c   :  { %v2521_v2 = vpop.permute.xlu1 %308 }
 0x28e   :  { %848 = vrot.lane.b32.xlu1 %v2521_v2, %s2301_s20 }
 0x290   :  { %v393_v3 = vpop.permute.xlu1 %392 }
 0x291   :  { %2100 = vmatmul.mubr.msk.f32.vlgmr.msra.gmra.mxu0 %vm317_vm2, %v393_v3 }
 0x292   :  { %2103 = vmatpush3.xpose.msk.msra.mxu0 %vm317_vm2, %v2494_v60  ;;  %2104 = vmatprep.mubr.msk.f32.mxu0 %vm2303_vm1, %v2302_v53 }
 0x293   :  { %2112 = vmatprep.subr.mxu0 %v2302_v53 }
 0x2f3   :  { %v469_v5 = vpop.permute.xlu0 %468 }
 0x2f4   :  { %2105 = vmatmul.mubr.msk.f32.vlgmr.msra.gmra.mxu0 %vm317_vm2, %v469_v5 }
 0x2f5   :  { %2113 = vmatpush3.xpose.msk.msra.mxu0 %vm317_vm2, %v2492_v59  ;;  %2114 = vmatprep.mubr.msk.f32.mxu0 %vm2303_vm1, %v2302_v53 }
 0x2f6   :  { %2122 = vmatprep.subr.mxu0 %v2302_v53 }
 0x2f7   :  { %v621_v6 = vpop.permute.xlu0 %620 }
 0x2f8   :  { %v545_v7 = vpop.permute.xlu1 %544  ;;  %2115 = vmatmul.mubr.msk.f32.vlgmr.msra.gmra.mxu0 %vm317_vm2, %v621_v6 }
 0x2f9   :  { %2110 = vmatmul.mubr.msk.f32.vlgmr.msra.gmra.mxu1 %vm317_vm2, %v545_v7  ;;  %2123 = vmatpush3.xpose.msk.msra.mxu0 %vm317_vm2, %v2498_v61 }
 0x2fa   :  { %2118 = vmatpush3.xpose.msk.msra.mxu1 %vm317_vm2, %v2509_v0  ;;  %2119 = vmatprep.mubr.msk.f32.mxu1 %vm2303_vm1, %v2302_v53 }
 0x2fb   :  { %v773_v8 = vpop.permute.xlu0 %772  ;;  %2127 = vmatprep.subr.mxu1 %v2302_v53  ;;  %2124 = vmatprep.mubr.msk.f32.mxu0 %vm2303_vm1, %v2302_v53 }
 0x2fc   :  { %v697_v9 = vpop.permute.xlu1 %696  ;;  %2125 = vmatmul.mubr.msk.f32.vlgmr.msra.gmra.mxu0 %vm317_vm2, %v773_v8  ;;  %2132 = vmatprep.subr.mxu0 %v2302_v53 }
 0x2fd   :  { %2120 = vmatmul.mubr.msk.f32.vlgmr.msra.gmra.mxu1 %vm317_vm2, %v697_v9  ;;  %2134 = vmatprep.mubr.msk.f32.mxu0 %vm2303_vm1, %v2302_v53 }
 0x2fe   :  { %2128 = vmatpush3.xpose.msk.msra.mxu1 %vm317_vm2, %v2521_v2  ;;  %2129 = vmatprep.mubr.msk.f32.mxu1 %vm2303_vm1, %v2302_v53 }
 0x2ff   :  { %2137 = vmatprep.subr.mxu1 %v2302_v53 }
 0x300   :  { %v849_v10 = vpop.permute.xlu1 %848 }
 0x301   :  { %2130 = vmatmul.mubr.msk.f32.vlgmr.msra.gmra.mxu1 %vm317_vm2, %v849_v10 }
 0x302   :  { %2139 = vmatprep.mubr.msk.f32.mxu1 %vm2303_vm1, %v2302_v53 }
 0x349   :  { %v388_v14 = vpop.f32.mrf.mxu0 }
 0x34a   :  { %v924_v16 = vmul.f32 0.35355338, %v388_v14 }
 0x34b   :  { %v2096_v17 = vpop.f32.mrf.mxu0 }
 0x34c   :  { %v934_v18 = vsel %vm2561_vm3, %v924_v16, -1e+30 }
 0x34d   :  { %v942_v19 = vsel %vm317_vm2, %v934_v18, -inf }
 0x34e   :  { %943 = vmax.xlane.f32.xlu0 %v942_v19 }
 0x351   :  { %v464_v20 = vpop.f32.mrf.mxu0 }
 0x352   :  { %v925_v21 = vmul.f32 0.35355338, %v464_v20 }
 0x353   :  { %v2101_v22 = vpop.f32.mrf.mxu0 }
 0x354   :  { %v935_v23 = vsel %vm2561_vm3, %v925_v21, -1e+30 }
 0x355   :  { %v945_v24 = vsel %vm317_vm2, %v935_v23, -inf }
 0x356   :  { %946 = vmax.xlane.f32.xlu1 %v945_v24 }
 0x3b4   :  { %v540_v25 = vpop.f32.mrf.mxu0 }
 0x3b5   :  { %v926_v33 = vmul.f32 0.35355338, %v540_v25 }
 0x3b6   :  { %v2106_v27 = vpop.f32.mrf.mxu0 }
 0x3b7   :  { %v936_v44 = vsel %vm2561_vm3, %v926_v33, -1e+30 }
 0x3b8   :  { %v692_v31 = vpop.f32.mrf.mxu0  ;;  %v948_v49 = vsel %vm317_vm2, %v936_v44, -inf }
 0x3b9   :  { %v616_v32 = vpop.f32.mrf.mxu1  ;;  %v928_v41 = vmul.f32 0.35355338, %v692_v31 }
 0x3ba   :  { %v927_v34 = vmul.f32 0.35355338, %v616_v32  ;;  %v2116_v35 = vpop.f32.mrf.mxu0 }
 0x3bb   :  { %v2111_v36 = vpop.f32.mrf.mxu1  ;;  %v938_v52 = vsel %vm2561_vm3, %v928_v41, -1e+30 }
 0x3bc   :  { %v844_v37 = vpop.f32.mrf.mxu0  ;;  %v937_v38 = vsel %vm2561_vm3, %v927_v34, -1e+30  ;;  %v954_v63 = vsel %vm317_vm2, %v938_v52, -inf }
 0x3bd   :  { %v768_v39 = vpop.f32.mrf.mxu1  ;;  %v951_v40 = vsel %vm317_vm2, %v937_v38, -inf  ;;  %v930_v50 = vmul.f32 0.35355338, %v844_v37 }
 0x3be   :  { %v929_v42 = vmul.f32 0.35355338, %v768_v39  ;;  %952 = vmax.xlane.f32.xlu0 %v951_v40  ;;  %v2126_v43 = vpop.f32.mrf.mxu0 }
 0x3bf   :  { %v2121_v45 = vpop.f32.mrf.mxu1  ;;  %v940_v3 = vsel %vm2561_vm3, %v930_v50, -1e+30 }
 0x3c0   :  { %v939_v46 = vsel %vm2561_vm3, %v929_v42, -1e+30  ;;  %v960_v5 = vsel %vm317_vm2, %v940_v3, -inf }
 0x3c1   :  { %v920_v47 = vpop.f32.mrf.mxu1  ;;  %v957_v48 = vsel %vm317_vm2, %v939_v46, -inf }
 0x3c2   :  { %v931_v51 = vmul.f32 0.35355338, %v920_v47  ;;  %958 = vmax.xlane.f32.xlu1 %v957_v48  ;;  %949 = vmax.xlane.f32.xlu0 %v948_v49 }
 0x3c3   :  { %v2131_v54 = vpop.f32.mrf.mxu1 }
 0x3c4   :  { %v941_v55 = vsel %vm2561_vm3, %v931_v51, -1e+30 }
 0x3c5   :  { %v963_v56 = vsel %vm317_vm2, %v941_v55, -inf }
 0x3c6   :  { %964 = vmax.xlane.f32.xlu1 %v963_v56  ;;  %955 = vmax.xlane.f32.xlu0 %v954_v63 }
 0x3ca   :  { %961 = vmax.xlane.f32.xlu0 %v960_v5 }
 0x3d7   :  { %1106 = vrot.lane.b32.xlu1 %v2481_v58, %s2307_s9  ;;  %v944_v6 = vpop.xlane.xlu0 %943 }
 0x3d8   :  { %v966_v7 = vsub.f32 %v934_v18, %v944_v6 }
 0x3da   :  { %v974_v9 = vmul.f32 1.442695, %v966_v7 }
 0x3db   :  { %1182 = vrot.lane.b32.xlu1 %v2494_v60, %s2307_s9 }
 0x3dc   :  { %2235 = vpow2.f32 %v974_v9 }
 0x3df   :  { %1258 = vrot.lane.b32.xlu1 %v2500_v62, %s2307_s9  ;;  %v947_v8 = vpop.xlane.xlu1 %946 }
 0x3e0   :  { %1030 = vrot.lane.b32.xlu0 %v2475_v57, %s2307_s9  ;;  %v967_v58 = vsub.f32 %v935_v23, %v947_v8 }
 0x3e2   :  { %v976_v10 = vmul.f32 1.442695, %v967_v58 }
 0x3e3   :  { %1410 = vrot.lane.b32.xlu1 %v2509_v0, %s2307_s9 }
 0x3e4   :  { %1334 = vrot.lane.b32.xlu0 %v2492_v59, %s2307_s9  ;;  %2237 = vpow2.f32 %v976_v10 }
 0x3e9   :  { %v2601_v60 = vpop.eup %2235 }
 0x3ea   :  { %v990_v62 = vsel %vm317_vm2, %v2601_v60, 0.0 }
 0x3f1   :  { %v2605_v57 = vpop.eup %2237 }
 0x3f2   :  { %v993_v0 = vsel %vm317_vm2, %v2605_v57, 0.0 }
 0x403   :  { %991 = vadd.xlane.f32.xlu0 %v990_v62 }
 0x407   :  { %994 = vadd.xlane.f32.xlu1 %v993_v0 }
 0x447   :  { %v953_v59 = vpop.xlane.xlu0 %952 }
 0x448   :  { %v969_v11 = vsub.f32 %v937_v38, %v953_v59 }
 0x44a   :  { %v980_v12 = vmul.f32 1.442695, %v969_v11 }
 0x44b   :  { %v959_v13 = vpop.xlane.xlu1 %958  ;;  %v950_v14 = vpop.xlane.xlu0 %949 }
 0x44c   :  { %2239 = vpow2.f32 %v980_v12  ;;  %v971_v15 = vsub.f32 %v939_v46, %v959_v13  ;;  %v968_v16 = vsub.f32 %v936_v44, %v950_v14 }
 0x44e   :  { %v984_v17 = vmul.f32 1.442695, %v971_v15  ;;  %v978_v18 = vmul.f32 1.442695, %v968_v16 }
 0x44f   :  { %v965_v19 = vpop.xlane.xlu1 %964  ;;  %v956_v20 = vpop.xlane.xlu0 %955 }
 0x450   :  { %2241 = vpow2.f32 %v984_v17  ;;  %v973_v21 = vsub.f32 %v941_v55, %v965_v19  ;;  %v970_v22 = vsub.f32 %v938_v52, %v956_v20 }
 0x451   :  { %2243 = vpow2.f32 %v978_v18 }
 0x452   :  { %v988_v23 = vmul.f32 1.442695, %v973_v21  ;;  %v982_v24 = vmul.f32 1.442695, %v970_v22 }
 0x453   :  { %v1107_v25 = vpop.permute.xlu1 %1106  ;;  %v962_v27 = vpop.xlane.xlu0 %961 }
 0x454   :  { %2245 = vpow2.f32 %v988_v23  ;;  %v972_v31 = vsub.f32 %v940_v3, %v962_v27  ;;  %2138 = vmatpush3.msra.mxu1 %v1107_v25 }
 0x455   :  { %2247 = vpow2.f32 %v982_v24  ;;  %2147 = vmatprep.subr.mxu1 %v2302_v53 }
 0x456   :  { %v986_v32 = vmul.f32 1.442695, %v972_v31 }
 0x457   :  { %v1031_v33 = vpop.permute.xlu0 %1030  ;;  %v1183_v46 = vpop.permute.xlu1 %1182 }
 0x458   :  { %2249 = vpow2.f32 %v986_v32  ;;  %2133 = vmatpush3.msra.mxu0 %v1031_v33 }
 0x459   :  { %v2240_v34 = vpop.eup %2239  ;;  %2142 = vmatprep.subr.mxu0 %v2302_v53 }
 0x45a   :  { %v999_v35 = vsel %vm317_vm2, %v2240_v34, 0.0 }
 0x45b   :  { %1000 = vadd.xlane.f32.xlu1 %v999_v35  ;;  %v1259_v47 = vpop.permute.xlu1 %1258  ;;  %v1335_v48 = vpop.permute.xlu0 %1334 }
 0x45d   :  { %v2242_v36 = vpop.eup %2241 }
 0x45e   :  { %v2244_v37 = vpop.eup %2243  ;;  %v1005_v38 = vsel %vm317_vm2, %v2242_v36, 0.0 }
 0x45f   :  { %1006 = vadd.xlane.f32.xlu1 %v1005_v38  ;;  %v996_v39 = vsel %vm317_vm2, %v2244_v37, 0.0  ;;  %v1411_v49 = vpop.permute.xlu1 %1410 }
 0x460   :  { %997 = vadd.xlane.f32.xlu0 %v996_v39 }
 0x461   :  { %v2246_v40 = vpop.eup %2245 }
 0x462   :  { %v2614_v41 = vpop.eup %2247  ;;  %v1011_v42 = vsel %vm317_vm2, %v2246_v40, 0.0 }
 0x463   :  { %1012 = vadd.xlane.f32.xlu1 %v1011_v42  ;;  %v1002_v43 = vsel %vm317_vm2, %v2614_v41, 0.0 }
 0x464   :  { %1003 = vadd.xlane.f32.xlu0 %v1002_v43 }
 0x465   :  { %v2619_v44 = vpop.eup %2249 }
 0x466   :  { %v1008_v45 = vsel %vm317_vm2, %v2619_v44, 0.0 }
 0x468   :  { %1009 = vadd.xlane.f32.xlu0 %v1008_v45 }
 0x474   :  { %1562 = vrot.lane.b32.xlu1 %v2521_v2, %s2307_s9 }
 0x47e   :  { %1486 = vrot.lane.b32.xlu0 %v2498_v61, %s2307_s9 }
 0x48c   :  { %v992_v50 = vpop.xlane.xlu0 %991 }
 0x48d   :  { %2251 = vrcp.f32 %v992_v50 }
 0x490   :  { %v995_v51 = vpop.xlane.xlu1 %994 }
 0x491   :  { %2253 = vrcp.f32 %v995_v51 }
 0x49a   :  { %v2252_v52 = vpop.eup %2251 }
 0x49b   :  { %v1022_v54 = vmul.f32 %v2252_v52, %v2601_v60 }
 0x49d   :  { %2135 = vmatmul.mubr.msk.f32.vlgmr.msra.gmra.mxu0 %vm317_vm2, %v1022_v54 }
 0x49e   :  { %v2254_v55 = vpop.eup %2253  ;;  %2143 = vmatpush3.msra.mxu0 %v1183_v46  ;;  %2144 = vmatprep.mubr.msk.f32.mxu0 %vm2303_vm1, %v2302_v53 }
 0x49f   :  { %v1023_v61 = vmul.f32 %v2254_v55, %v2605_v57  ;;  %2152 = vmatprep.subr.mxu0 %v2302_v53 }
 0x4a1   :  { %2140 = vmatmul.mubr.msk.f32.vlgmr.msra.gmra.mxu1 %vm317_vm2, %v1023_v61 }
 0x4a2   :  { %2148 = vmatpush3.msra.mxu1 %v1259_v47  ;;  %2149 = vmatprep.mubr.msk.f32.mxu1 %vm2303_vm1, %v2302_v53 }
 0x4a3   :  { %2157 = vmatprep.subr.mxu1 %v2302_v53 }
 0x4e4   :  { %v1001_v2 = vpop.xlane.xlu1 %1000 }
 0x4e5   :  { %2255 = vrcp.f32 %v1001_v2 }
 0x4e8   :  { %v1007_v56 = vpop.xlane.xlu1 %1006 }
 0x4e9   :  { %2257 = vrcp.f32 %v1007_v56  ;;  %v998_v63 = vpop.xlane.xlu0 %997  ;;  %v1735_v56 = vld [vmem:[%s2771_s10 + $0x8] sm:$0xff] }
 0x4ea   :  { %2259 = vrcp.f32 %v998_v63  ;;  %v1851_v63 = vld [vmem:[%s2773_s12 + $0x78] sm:$0xff] }
 0x4ec   :  { %v1013_v3 = vpop.xlane.xlu1 %1012 }
 0x4ed   :  { %2261 = vrcp.f32 %v1013_v3  ;;  %v1004_v5 = vpop.xlane.xlu0 %1003  ;;  %v1850_v3 = vld [vmem:[%s2773_s12 + $0x70] sm:$0xff] }
 0x4ee   :  { %2263 = vrcp.f32 %v1004_v5  ;;  %v1849_v5 = vld [vmem:[%s2773_s12 + $0x68] sm:$0xff] }
 0x4f0   :  { %v1563_v62 = vpop.permute.xlu1 %1562 }
 0x4f1   :  { %v1010_v6 = vpop.xlane.xlu0 %1009 }
 0x4f2   :  { %v2256_v7 = vpop.eup %2255  ;;  %2265 = vrcp.f32 %v1010_v6 }
 0x4f3   :  { %v1025_v8 = vmul.f32 %v2256_v7, %v2240_v34 }
 0x4f5   :  { %2150 = vmatmul.mubr.msk.f32.vlgmr.msra.gmra.mxu1 %vm317_vm2, %v1025_v8  ;;  %v1487_v12 = vpop.permute.xlu0 %1486 }
 0x4f6   :  { %v2258_v9 = vpop.eup %2257  ;;  %2158 = vmatpush3.msra.mxu1 %v1411_v49  ;;  %2159 = vmatprep.mubr.msk.f32.mxu1 %vm2303_vm1, %v2302_v53 }
 0x4f7   :  { %v2260_v58 = vpop.eup %2259  ;;  %2167 = vmatprep.subr.mxu1 %v2302_v53  ;;  %v1027_v10 = vmul.f32 %v2258_v9, %v2242_v36 }
 0x4f8   :  { %v1024_v60 = vmul.f32 %v2260_v58, %v2244_v37 }
 0x4f9   :  { %2160 = vmatmul.mubr.msk.f32.vlgmr.msra.gmra.mxu1 %vm317_vm2, %v1027_v10 }
 0x4fa   :  { %v2262_v57 = vpop.eup %2261  ;;  %2145 = vmatmul.mubr.msk.f32.vlgmr.msra.gmra.mxu0 %vm317_vm2, %v1024_v60  ;;  %2168 = vmatpush3.msra.mxu1 %v1563_v62 }
 0x4fb   :  { %v2264_v0 = vpop.eup %2263  ;;  %2153 = vmatpush3.msra.mxu0 %v1335_v48  ;;  %2154 = vmatprep.mubr.msk.f32.mxu0 %vm2303_vm1, %v2302_v53  ;;  %v1029_v59 = vmul.f32 %v2262_v57, %v2246_v40  ;;  %v1996_v57 = vld [vmem:[%s2765_s4] ss:$0 sm:$0xff] }
 0x4fc   :  { %2162 = vmatprep.subr.mxu0 %v2302_v53  ;;  %2169 = vmatprep.mubr.msk.f32.mxu1 %vm2303_vm1, %v2302_v53  ;;  %v1026_v11 = vmul.f32 %v2264_v0, %v2614_v41 }
 0x4fd   :  { %2170 = vmatmul.mubr.msk.f32.vlgmr.msra.gmra.mxu1 %vm317_vm2, %v1029_v59  ;;  %2183 = vmatprep.subr.mxu1 %v1851_v63  ;;  %v1997_v59 = vld [vmem:[%s2766_s5] ss:$0 sm:$0xff]  ;;  %s2312_s5 = smov [#allocation2]  }
 0x4fe   :  { %2155 = vmatmul.mubr.msk.f32.vlgmr.msra.gmra.mxu0 %vm317_vm2, %v1026_v11  ;;  %2184 = vmatpush3.msra.mxu1 %v1851_v63  ;;  %s1953_s0 = sshll.u32 %s2312_s5, 4  ;;  %s1954_s0 = int_to_ptr.vmem [resolvable:$true] %s1953_s0 }
 0x4ff   :  { %v2266_v13 = vpop.eup %2265  ;;  %2163 = vmatpush3.msra.mxu0 %v1487_v12  ;;  %2164 = vmatprep.mubr.msk.f32.mxu0 %vm2303_vm1, %v2302_v53  ;;  %p2284_p1 = scmp.lt.s32.totalorder %s1954_s0, %s1954_s0 }
 0x500   :  { %v1028_v14 = vmul.f32 %v2266_v13, %v2619_v44  ;;  %2185 = vmatprep.subr.mxu1 %v1850_v3 }
 0x501   :  { %2186 = vmatpush3.msra.mxu1 %v1850_v3 }
 0x502   :  { %2165 = vmatmul.mubr.msk.f32.vlgmr.msra.gmra.mxu0 %vm317_vm2, %v1028_v14  ;;  %2187 = vmatprep.subr.mxu1 %v1849_v5 }
 0x503   :  { %2188 = vmatpush3.msra.mxu1 %v1849_v5 }
 0x55d   :  { %v1102_v15 = vpop.f32.mrf.mxu0 }
 0x55f   :  { %v2136_v16 = vpop.f32.mrf.mxu0 }
 0x561   :  { %v1178_v17 = vpop.f32.mrf.mxu1 }
 0x563   :  { %v2141_v18 = vpop.f32.mrf.mxu1 }
 0x5b5   :  { %v1330_v19 = vpop.f32.mrf.mxu1 }
 0x5b6   :  { %1642 = vrot.lane.b32.xlu1 %v1330_v19, %s2308_s25 }
 0x5b7   :  { %v2151_v20 = vpop.f32.mrf.mxu1 }
 0x5b9   :  { %v1482_v21 = vpop.f32.mrf.mxu1 }
 0x5ba   :  { %v1254_v22 = vpop.f32.mrf.mxu0  ;;  %1650 = vrot.lane.b32.xlu1 %v1482_v21, %s2309_s26 }
 0x5bb   :  { %1640 = vrot.lane.b32.xlu0 %v1254_v22, %s2308_s25  ;;  %v2161_v53 = vpop.f32.mrf.mxu1 }
 0x5bc   :  { %v2146_v23 = vpop.f32.mrf.mxu0 }
 0x5bd   :  { %v1634_v24 = vpop.f32.mrf.mxu1  ;;  %v1848_v23 = vld [vmem:[%s2773_s12 + $0x60] sm:$0xff] }
 0x5be   :  { %v1406_v25 = vpop.f32.mrf.mxu0  ;;  %1658 = vrot.lane.b32.xlu1 %v1634_v24, %s2310_s27  ;;  %2189 = vmatprep.subr.mxu1 %v1848_v23  ;;  %v1847_v24 = vld [vmem:[%s2773_s12 + $0x58] sm:$0xff] }
 0x5bf   :  { %1648 = vrot.lane.b32.xlu0 %v1406_v25, %s2309_s26  ;;  %v2171_v27 = vpop.f32.mrf.mxu1  ;;  %2190 = vmatpush3.msra.mxu1 %v1848_v23  ;;  %v1846_v25 = vld [vmem:[%s2773_s12 + $0x50] sm:$0xff] }
 0x5c0   :  { %v2156_v31 = vpop.f32.mrf.mxu0  ;;  %2191 = vmatprep.subr.mxu1 %v1847_v24  ;;  %v1845_v27 = vld [vmem:[%s2773_s12 + $0x48] sm:$0xff] }
 0x5c1   :  { %2192 = vmatpush3.msra.mxu1 %v1847_v24  ;;  %v1844_v31 = vld [vmem:[%s2773_s12 + $0x40] sm:$0xff] }
 0x5c2   :  { %v1558_v32 = vpop.f32.mrf.mxu0  ;;  %2193 = vmatprep.subr.mxu1 %v1846_v25 }
 0x5c3   :  { %1656 = vrot.lane.b32.xlu0 %v1558_v32, %s2310_s27  ;;  %2194 = vmatpush3.msra.mxu1 %v1846_v25  ;;  %v1843_v32 = vld [vmem:[%s2773_s12 + $0x38] sm:$0xff] }
 0x5c4   :  { %v2166_v33 = vpop.f32.mrf.mxu0  ;;  %2195 = vmatprep.subr.mxu1 %v1845_v27 }
 0x5c5   :  { %2196 = vmatpush3.msra.mxu1 %v1845_v27  ;;  %v1842_v33 = vld [vmem:[%s2773_s12 + $0x30] sm:$0xff] }
 0x5c6   :  { %2197 = vmatprep.subr.mxu1 %v1844_v31 }
 0x5c7   :  { %2198 = vmatpush3.msra.mxu1 %v1844_v31 }
 0x5c8   :  { %2199 = vmatprep.subr.mxu1 %v1843_v32 }
 0x5c9   :  { %2200 = vmatpush3.msra.mxu1 %v1843_v32 }
 0x5ca   :  { %2201 = vmatprep.subr.mxu1 %v1842_v33 }
 0x5cb   :  { %2202 = vmatpush3.msra.mxu1 %v1842_v33 }
 0x628   :  { %v1643_v34 = vpop.permute.xlu1 %1642 }
 0x629   :  { %v1663_v37 = vsel %vm317_vm2, %v1178_v17, %v1643_v34  ;;  %v1841_v34 = vld [vmem:[%s2773_s12 + $0x28] sm:$0xff] }
 0x62a   :  { %2203 = vmatprep.subr.mxu1 %v1841_v34 }
 0x62b   :  { %2204 = vmatpush3.msra.mxu1 %v1841_v34 }
 0x62c   :  { %v1651_v35 = vpop.permute.xlu1 %1650 }
 0x62d   :  { %v1641_v36 = vpop.permute.xlu0 %1640  ;;  %v1666_v38 = vsel %vm1664_vm4, %v1663_v37, %v1651_v35  ;;  %v1840_v35 = vld [vmem:[%s2773_s12 + $0x20] sm:$0xff]  ;;  %v1838_v37 = vld [vmem:[%s2773_s12 + $0x10] sm:$0xff] }
 0x62e   :  { %v1662_v43 = vsel %vm317_vm2, %v1102_v15, %v1641_v36  ;;  %2205 = vmatprep.subr.mxu1 %v1840_v35  ;;  %v1839_v36 = vld [vmem:[%s2773_s12 + $0x18] sm:$0xff] }
 0x62f   :  { %2206 = vmatpush3.msra.mxu1 %v1840_v35 }
 0x630   :  { %v1659_v39 = vpop.permute.xlu1 %1658  ;;  %2207 = vmatprep.subr.mxu1 %v1839_v36 }
 0x631   :  { %v1669_v40 = vsel %vm1667_vm5, %v1666_v38, %v1659_v39  ;;  %v1649_v41 = vpop.permute.xlu0 %1648  ;;  %2208 = vmatpush3.msra.mxu1 %v1839_v36  ;;  %v1837_v38 = vld [vmem:[%s2773_s12 + $0x8] sm:$0xff]  ;;  %v1836_v39 = vld [vmem:[%s2773_s12] sm:$0xff] }
 0x632   :  { %v2659_v42 = vadd.f32 %v1669_v40, %v2405_v4  ;;  %v1665_v45 = vsel %vm1664_vm4, %v1662_v43, %v1649_v41  ;;  %2209 = vmatprep.subr.mxu1 %v1838_v37  ;;  %v1998_v40 = vld [vmem:[%s2772_s11] ss:$0 sm:$0xff] }
 0x633   :  { %2210 = vmatpush3.msra.mxu1 %v1838_v37 }
 0x634   :  { %v1677_v44 = vsel %vm63_vm0, %v2659_v42, 0.0  ;;  %2211 = vmatprep.subr.mxu1 %v1837_v38 }
 0x635   :  { %v1657_v46 = vpop.permute.xlu0 %1656  ;;  %1678 = vadd.xlane.f32.xlu1 %v1677_v44  ;;  %2212 = vmatpush3.msra.mxu1 %v1837_v38 }
 0x636   :  { %v1668_v47 = vsel %vm1667_vm5, %v1665_v45, %v1657_v46  ;;  %2213 = vmatprep.subr.mxu1 %v1836_v39 }
 0x637   :  { %v2665_v48 = vadd.f32 %v1668_v47, %v2395_v1  ;;  %2214 = vmatpush3.msra.mxu1 %v1836_v39 }
 0x639   :  { %v1674_v49 = vsel %vm63_vm0, %v2665_v48, 0.0 }
 0x63a   :  { %1675 = vadd.xlane.f32.xlu0 %v1674_v49 }
 0x646   :  { %1718 = vrot.lane.b32.xlu1 %v2447_v29, %s2311_s1 }
 0x64a   :  { %1726 = vrot.lane.b32.xlu1 %v2444_v28, %s2307_s9  ;;  %v1736_v28 = vld [vmem:[%s2771_s10 + $0x10] sm:$0xff] }
 0x64e   :  { %1728 = vrot.lane.b32.xlu1 %v2442_v26, %s2307_s9  ;;  %v1737_v26 = vld [vmem:[%s2771_s10 + $0x18] sm:$0xff] }
 0x64f   :  { %2172 = vmatprep.subr.mxu0 %v1737_v26 }
 0x650   :  { %2173 = vmatpush3.msra.mxu0 %v1737_v26 }
 0x651   :  { %2174 = vmatprep.subr.mxu0 %v1736_v28 }
 0x652   :  { %2175 = vmatpush3.msra.mxu0 %v1736_v28 }
 0x653   :  { %2176 = vmatprep.subr.mxu0 %v1735_v56 }
 0x654   :  { %2177 = vmatpush3.msra.mxu0 %v1735_v56 }
 0x6be   :  { %v1679_v4 = vpop.xlane.xlu1 %1678 }
 0x6bf   :  { %v1681_v50 = vmul.f32 0.03125, %v1679_v4 }
 0x6c1   :  { %v1683_v1 = vsub.f32 %v2659_v42, %v1681_v50 }
 0x6c2   :  { %v1719_v62 = vpop.permute.xlu1 %1718 }
 0x6c3   :  { %v1676_v51 = vpop.xlane.xlu0 %1675  ;;  %v1685_v2 = vmul.f32 %v1683_v1, %v1683_v1 }
 0x6c4   :  { %v1680_v52 = vmul.f32 0.03125, %v1676_v51 }
 0x6c5   :  { %v1689_v29 = vsel %vm63_vm0, %v1685_v2, 0.0 }
 0x6c6   :  { %v1682_v54 = vsub.f32 %v2665_v48, %v1680_v52  ;;  %v1727_v15 = vpop.permute.xlu1 %1726 }
 0x6c8   :  { %v1684_v55 = vmul.f32 %v1682_v54, %v1682_v54 }
 0x6ca   :  { %v1686_v61 = vsel %vm63_vm0, %v1684_v55, 0.0  ;;  %v1729_v22 = vpop.permute.xlu1 %1728 }
 0x6cb   :  { %1687 = vadd.xlane.f32.xlu0 %v1686_v61  ;;  %v2001_v61 = vld [vmem:[%s2774_s13] ss:$0 sm:$0xff]  ;;  %s2279_s13 = scalar_lea.vmem %s1954_s0, 256 }
 0x6cc   :  { %p2280_p0 = scmp.ne.s32.totalorder %s1954_s0, %s2279_s13  ;;  %p2285_p2 = scmp.lt.s32.totalorder %s2279_s13, %s2279_s13 }
 0x6ce   :  { %p2286_p3 = por %p2285_p2, %p2284_p1 }
 0x6cf   :  { %1690 = vadd.xlane.f32.xlu0 %v1689_v29 }
 0x6d0   :  { %p2287_p4 = pnand %p2286_p3, %p2280_p0 }
 0x6e5   :  { %1716 = vrot.lane.b32.xlu0 %v2452_v30, %s2311_s1  ;;  %v1734_v30 = vld [vmem:[%s2771_s10] sm:$0xff] }
 0x6e6   :  { %2178 = vmatprep.subr.mxu0 %v1734_v30 }
 0x6e7   :  { %2179 = vmatpush3.msra.mxu0 %v1734_v30 }
 0x754   :  { %v1688_v6 = vpop.xlane.xlu0 %1687 }
 0x755   :  { %v1692_v7 = vmul.f32 0.03125, %v1688_v6 }
 0x757   :  { %v1694_v8 = vadd.f32 1e-05, %v1692_v7 }
 0x758   :  { %v1691_v9 = vpop.xlane.xlu0 %1690 }
 0x759   :  { %2267 = vrsqrt.f32 %v1694_v8  ;;  %v1693_v58 = vmul.f32 0.03125, %v1691_v9 }
 0x75b   :  { %v1695_v10 = vadd.f32 1e-05, %v1693_v58 }
 0x75c   :  { %v1717_v16 = vpop.permute.xlu0 %1716 }
 0x75d   :  { %2269 = vrsqrt.f32 %v1695_v10 }
 0x766   :  { %v2268_v60 = vpop.eup %2267 }
 0x767   :  { %v1698_v0 = vmul.f32 %v2268_v60, %v1682_v54 }
 0x769   :  { %v1706_v11 = vmul.f32 %v1996_v57, %v1698_v0 }
 0x76a   :  { %v2270_v12 = vpop.eup %2269 }
 0x76b   :  { %v1699_v13 = vmul.f32 %v2270_v12, %v1683_v1  ;;  %v1714_v14 = vadd.f32 %v1997_v59, %v1706_v11 }
 0x76d   :  { %v1707_v17 = vmul.f32 %v1996_v57, %v1699_v13  ;;  %v1722_v18 = vmul.f32 %v1717_v16, %v1714_v14 }
 0x76f   :  { %v1715_v19 = vadd.f32 %v1997_v59, %v1707_v17  ;;  %v1732_v20 = vadd.f32 %v1727_v15, %v1722_v18 }
 0x771   :  { %v1723_v21 = vmul.f32 %v1719_v62, %v1715_v19  ;;  %2180 = vmatprep.mubr.msk.f32.mxu0 %vm63_vm0, %v1732_v20 }
 0x773   :  { %v1733_v53 = vadd.f32 %v1729_v22, %v1723_v21 }
 0x775   :  { %2181 = vmatmul.mubr.msk.f32.vlgmr.msra.gmra.mxu0 %vm63_vm0, %v1733_v53 }
 0x835   :  { %v2182_v41 = vpop.f32.mrf.mxu0 }
 0x836   :  { %v1823_v43 = vadd.f32 %v2182_v41, %v1998_v40 }
 0x837   :  { %v1817_v44 = vpop.f32.mrf.mxu0 }
 0x838   :  { %v1829_v45 = vmul.f32 0.70710677, %v1823_v43  ;;  %v1818_v46 = vadd.f32 %v1998_v40, %v1817_v44  ;;  %v1827_v1 = vmul.f32 0.5, %v1823_v43 }
 0x83a   :  { %2271 = verf.f32 %v1829_v45  ;;  %v1828_v47 = vmul.f32 0.70710677, %v1818_v46  ;;  %v1826_v51 = vmul.f32 0.5, %v1818_v46 }
 0x83c   :  { %2273 = verf.f32 %v1828_v47 }
 0x847   :  { %v2272_v49 = vpop.eup %2271 }
 0x848   :  { %v1833_v50 = vadd.f32 1.0, %v2272_v49 }
 0x849   :  { %v2274_v4 = vpop.eup %2273 }
 0x84a   :  { %v1832_v52 = vadd.f32 1.0, %v2274_v4  ;;  %v1835_v55 = vmul.f32 %v1833_v50, %v1827_v1 }
 0x84c   :  { %v1834_v54 = vmul.f32 %v1832_v52, %v1826_v51 }
 0x84e   :  { %2215 = vmatprep.mubr.f32.mxu1 %v1834_v54 }
 0x84f   :  { %2216 = vmatmul.mubr.f32.vlgmr.msra.gmra.mxu1 %v1835_v55 }
 0x90f   :  { %v2217_v2 = vpop.f32.mrf.mxu1 }
 0x910   :  { %v1931_v29 = vadd.f32 %v2217_v2, %v2001_v61 }
 0x911   :  { %v1925_v26 = vpop.f32.mrf.mxu1 }
 0x912   :  { %v1937_v28 = vmul.f32 0.70710677, %v1931_v29  ;;  %v1926_v56 = vadd.f32 %v2001_v61, %v1925_v26  ;;  %v1935_v3 = vmul.f32 0.5, %v1931_v29 }
 0x914   :  { %2275 = verf.f32 %v1937_v28  ;;  %v1936_v30 = vmul.f32 0.70710677, %v1926_v56  ;;  %v1934_v8 = vmul.f32 0.5, %v1926_v56 }
 0x916   :  { %2277 = verf.f32 %v1936_v30 }
 0x921   :  { %v2276_v63 = vpop.eup %2275 }
 0x922   :  { %v1941_v5 = vadd.f32 1.0, %v2276_v63 }
 0x923   :  { %v2278_v6 = vpop.eup %2277 }
 0x924   :  { %v1943_v7 = vmul.f32 %v1941_v5, %v1935_v3  ;;  %v1940_v9 = vadd.f32 1.0, %v2278_v6 }
 0x926   :  { %v1945_v58 = vadd.f32 %v1943_v7, %v2659_v42  ;;  %v1942_v10 = vmul.f32 %v1940_v9, %v1934_v8 }
 0x928   :  { %1947 = vst.msk [vmem:[#allocation2 + $0x8] sm:$0xff] %vm63_vm0, %v1945_v58  ;;  %v1944_v60 = vadd.f32 %v1942_v10, %v2665_v48 }
 0x92a   :  { %1946 = vst.msk [vmem:[#allocation2] sm:$0xff] %vm63_vm0, %v1944_v60 }
 0x92b   :  { %2290 = shalt.err (!%p2287_p4)
}
 0x92c   :  { %s2313_s9 = smov 128  }
 0x92d   :  { %1959 = dma.vmem_to_hbm [thread:$0]  %s1954_s0, 256, %s2775_s14, [#allocation3], %s2313_s9, %s2313_s9, %s2308_s25  }
 0x92e   :  { %2299 = dma.done.wait [#allocation3], 256  }
 0x92f   :  { %2300 = vsyncadd [#allocation3], 4294967040 }
 0x930   :  { %1963 = vsyncpa [#allocation3], 1 }

</bundles_post_ra>
